<compile_context>
chip_gen: v7x
topology: tpu7x:2x2x1
jax: 0.10.0
libtpu: 0.0.40
codegen_flags: <defaults>
</compile_context>

<pallas_src>
import jax
import jax.numpy as jnp
from jax.experimental import pallas as pl
from jax.experimental.pallas import tpu as pltpu

_LANE = 128
_SUBLANE = 8
# Per-buffer (pred tile + target tile) VMEM budget; double-buffering doubles it,
# keeping total resident VMEM ~12-14 MiB (safe on every generation incl. v7x).
_TILE_BUDGET_BYTES = 6 * 1024 * 1024


def _round_up(x, m):
    return ((x + m - 1) // m) * m


def _vmem_limit_bytes():
    """Generation-aware scoped-VMEM limit (v7x: 64 MiB physical vs 128 MiB)."""
    try:
        cap = int(pltpu.get_tpu_info().vmem_capacity_bytes)
    except Exception:  # pragma: no cover - older runtimes / interpret mode
        cap = 64 * 1024 * 1024
    return min(cap // 2, 64 * 1024 * 1024)


def nll_loss(pred, target, trans_feat=None, *, tile_rows=None):
    """Pallas equivalent of get_loss.forward(pred, target, trans_feat).

    pred:   (N, C) log-probabilities (any float dtype; streamed natively)
    target: (N,)   integer class indices in [0, C)
    trans_feat: unused, exactly like the reference module.
    """
    del trans_feat  # the reference module ignores it
    n, c = pred.shape
    itemsize = jnp.dtype(pred.dtype).itemsize

    # ---- tile sizing: as many batch rows as the VMEM budget allows ----------
    # Per-row VMEM footprint of one tile: pred row (lane-padded C) + int32
    # target row (lane-padded to 128).
    c_lane = _round_up(c, _LANE)
    per_row_bytes = c_lane * itemsize + _LANE * 4
    if tile_rows is None:
        tile_rows = (_TILE_BUDGET_BYTES // per_row_bytes) // _SUBLANE * _SUBLANE
    tile_rows = max(_SUBLANE, _round_up(int(tile_rows), _SUBLANE))
    tile_rows = min(tile_rows, _round_up(n, _SUBLANE))  # never exceed the data
    n_tiles = pl.cdiv(n, tile_rows)

    tgt2d = target.astype(jnp.int32).reshape(n, 1)  # tiny; no pred pad needed
    inv_n = 1.0 / float(n)

    def kernel(pred_ref, tgt_ref, out_ref, acc_ref):
        i = pl.program_id(0)

        @pl.when(i == 0)
        def _init():
            acc_ref[...] = jnp.zeros_like(acc_ref)

        pred_t = pred_ref[...]                                # (tm, C) native
        tgt_t = tgt_ref[...]                                  # (tm, 1) int32
        col_ids = jax.lax.broadcasted_iota(jnp.int32, pred_t.shape, 1)
        row_ids = jax.lax.broadcasted_iota(jnp.int32, (tile_rows, 1), 0)
        valid = (row_ids + i * tile_rows) < n                 # mask batch tail
        picked = jnp.where((col_ids == tgt_t) & valid, pred_t,
                           jnp.zeros_like(pred_t))
        # Row-sum in native dtype is exact (<= 1 non-zero per row); only the
        # (tm, 1) column is up-cast before the f32 accumulation.
        row_sum = jnp.sum(picked, axis=1, keepdims=True).astype(jnp.float32)
        acc_ref[...] = acc_ref[...] + jnp.sum(row_sum)

        @pl.when(i == pl.num_programs(0) - 1)
        def _finalize():
            out_ref[...] = acc_ref[...] * (-inv_n)  # fold -1/N once

    out = pl.pallas_call(
        kernel,
        out_shape=jax.ShapeDtypeStruct((1, 1), jnp.float32),
        grid_spec=pltpu.PrefetchScalarGridSpec(
            num_scalar_prefetch=0,
            grid=(n_tiles,),
            in_specs=[
                # Last block dim == full C (legal via the full-array-dim
                # exception), so no class padding and no HBM copy of pred.
                pl.BlockSpec((tile_rows, c), lambda i: (i, 0)),
                pl.BlockSpec((tile_rows, 1), lambda i: (i, 0)),
            ],
            out_specs=pl.BlockSpec((1, 1), lambda i: (0, 0)),
            scratch_shapes=[pltpu.VMEM((1, 1), jnp.float32)],
        ),
        compiler_params=pltpu.CompilerParams(
            dimension_semantics=("arbitrary",),
            vmem_limit_bytes=_vmem_limit_bytes(),
        ),
    )(pred, tgt2d)

    return out[0, 0]


if __name__ == "__main__":
    key = jax.random.PRNGKey(0)
    k1, k2, k3, k4, k5, k6 = jax.random.split(key, 6)

    # Case 1: f32 log-probs, batch=8, classes=16 (C < 128 -> full-dim block).
    N, C = 8, 16
    pred = jax.nn.log_softmax(
        jax.random.normal(k1, (N, C), dtype=jnp.float32), axis=-1)
    target = jax.random.randint(k2, (N,), 0, C, dtype=jnp.int32)
    trans_feat = jax.random.normal(k1, (N, 3, 3), dtype=jnp.float32)  # ignored
    loss = jax.block_until_ready(nll_loss(pred, target, trans_feat))
    ref = -jnp.mean(pred[jnp.arange(N), target])
    assert jnp.allclose(loss, ref, atol=1e-5), (loss, ref)

    # Case 2: bf16 input (streamed natively), ragged batch (tail-mask path).
    N2, C2 = 13, 40
    pred2 = jax.nn.log_softmax(
        jax.random.normal(k3, (N2, C2), dtype=jnp.float32),
        axis=-1).astype(jnp.bfloat16)
    target2 = jax.random.randint(k4, (N2,), 0, C2, dtype=jnp.int32)
    loss2 = jax.block_until_ready(nll_loss(pred2, target2, None))
    ref2 = -jnp.mean(pred2.astype(jnp.float32)[jnp.arange(N2), target2])
    assert jnp.allclose(loss2, ref2, atol=1e-3), (loss2, ref2)

    # Case 3: forced small tile -> multi-step accumulator + partial tail block.
    N3, C3 = 20, 40
    pred3 = jax.nn.log_softmax(
        jax.random.normal(k5, (N3, C3), dtype=jnp.float32), axis=-1)
    target3 = jax.random.randint(k6, (N3,), 0, C3, dtype=jnp.int32)
    loss3 = jax.block_until_ready(nll_loss(pred3, target3, None, tile_rows=8))
    ref3 = -jnp.mean(pred3[jnp.arange(N3), target3])
    assert jnp.allclose(loss3, ref3, atol=1e-5), (loss3, ref3)

    print("KERNEL_OK")
</pallas_src>

<mosaic_0001>
module attributes {stable_mosaic.version = 11 : i64} {
  func.func @kernel(%arg0: i32, %arg1: memref<8x16xf32, #tpu.memory_space<vmem>>, %arg2: memref<8x1xi32, #tpu.memory_space<vmem>>, %arg3: memref<1x1xf32, #tpu.memory_space<vmem>>, %arg4: memref<1x1xf32, #tpu.memory_space<vmem>>) attributes {dimension_semantics = [#tpu.dimension_semantics<arbitrary>], iteration_bounds = array<i64: 1>, scalar_prefetch = 0 : i64, scratch_operands = 1 : i64, tpu.core_type = #tpu.core_type<tc>, window_params = [{transform_indices = @transform_0, window_bounds = array<i64: 8, 16>}, {transform_indices = @transform_1, window_bounds = array<i64: 8, 1>}, {pipeline_mode = #tpu.pipeline_mode<synchronous>, transform_indices = @transform_2, window_bounds = array<i64: 1, 1>}]} {
    %c0_i32 = arith.constant 0 : i32
    %0 = arith.cmpi eq, %arg0, %c0_i32 : i32
    %1 = arith.extui %0 : i1 to i32
    %c0_i32_0 = arith.constant 0 : i32
    %2 = arith.cmpi ne, %1, %c0_i32_0 : i32
    scf.if %2 {
      %cst_13 = arith.constant 0.000000e+00 : f32
      %31 = vector.broadcast %cst_13 : f32 to vector<1x1xf32>
      %c0_14 = arith.constant 0 : index
      %c0_15 = arith.constant 0 : index
      %32 = vector.load %arg4[%c0_14, %c0_15] : memref<1x1xf32, #tpu.memory_space<vmem>>, vector<1x1xf32>
      tpu.vector_store %arg4[%c0_14, %c0_15], %31 {strides = array<i32>} : memref<1x1xf32, #tpu.memory_space<vmem>>, vector<1x1xf32>,
    } else {
    }
    %c0 = arith.constant 0 : index
    %c0_1 = arith.constant 0 : index
    %3 = vector.load %arg1[%c0, %c0_1] : memref<8x16xf32, #tpu.memory_space<vmem>>, vector<8x16xf32>
    %c0_2 = arith.constant 0 : index
    %c0_3 = arith.constant 0 : index
    %4 = vector.load %arg2[%c0_2, %c0_3] : memref<8x1xi32, #tpu.memory_space<vmem>>, vector<8x1xi32>
    %5 = tpu.iota {dimensions = array<i32: 1>} : vector<8x16xi32>
    %6 = tpu.iota {dimensions = array<i32: 0>} : vector<8x1xi32>
    %c8_i32 = arith.constant 8 : i32
    %7 = arith.muli %arg0, %c8_i32 : i32
    %8 = vector.broadcast %7 : i32 to vector<8x1xi32>
    %9 = arith.addi %6, %8 : vector<8x1xi32>
    %c8_i32_4 = arith.constant 8 : i32
    %10 = vector.broadcast %c8_i32_4 : i32 to vector<8x1xi32>
    %11 = arith.cmpi slt, %9, %10 : vector<8x1xi32>
    %12 = vector.broadcast %4 : vector<8x1xi32> to vector<8x16xi32>
    %13 = arith.cmpi eq, %5, %12 : vector<8x16xi32>
    %14 = vector.broadcast %11 : vector<8x1xi1> to vector<8x16xi1>
    %15 = arith.andi %13, %14 : vector<8x16xi1>
    %cst = arith.constant 0.000000e+00 : f32
    %16 = vector.broadcast %cst : f32 to vector<8x16xf32>
    %17 = arith.select %15, %3, %16 : vector<8x16xi1>, vector<8x16xf32>
    %cst_5 = arith.constant dense<0.000000e+00> : vector<8xf32>
    %18 = vector.multi_reduction <add>, %17, %cst_5 [1] : vector<8x16xf32> to vector<8xf32>
    %19 = vector.shape_cast %18 : vector<8xf32> to vector<8x1xf32>
    %c0_6 = arith.constant 0 : index
    %c0_7 = arith.constant 0 : index
    %20 = vector.load %arg4[%c0_6, %c0_7] : memref<1x1xf32, #tpu.memory_space<vmem>>, vector<1x1xf32>
    %21 = vector.shape_cast %19 : vector<8x1xf32> to vector<1x8x1xf32>
    %cst_8 = arith.constant dense<0.000000e+00> : vector<1xf32>
    %22 = vector.multi_reduction <add>, %21, %cst_8 [1, 2] : vector<1x8x1xf32> to vector<1xf32>
    %23 = vector.shape_cast %22 : vector<1xf32> to vector<1x1x1xf32>
    %24 = vector.extract %23[0, 0, 0] : f32 from vector<1x1x1xf32>
    %25 = vector.broadcast %24 : f32 to vector<1x1xf32>
    %26 = arith.addf %20, %25 : vector<1x1xf32>
    %c0_9 = arith.constant 0 : index
    %c0_10 = arith.constant 0 : index
    %27 = vector.load %arg4[%c0_9, %c0_10] : memref<1x1xf32, #tpu.memory_space<vmem>>, vector<1x1xf32>
    tpu.vector_store %arg4[%c0_9, %c0_10], %26 {strides = array<i32>} : memref<1x1xf32, #tpu.memory_space<vmem>>, vector<1x1xf32>,
    %c0_i32_11 = arith.constant 0 : i32
    %28 = arith.cmpi eq, %arg0, %c0_i32_11 : i32
    %29 = arith.extui %28 : i1 to i32
    %c0_i32_12 = arith.constant 0 : i32
    %30 = arith.cmpi ne, %29, %c0_i32_12 : i32
    scf.if %30 {
      %c0_13 = arith.constant 0 : index
      %c0_14 = arith.constant 0 : index
      %31 = vector.load %arg4[%c0_13, %c0_14] : memref<1x1xf32, #tpu.memory_space<vmem>>, vector<1x1xf32>
      %cst_15 = arith.constant -1.250000e-01 : f32
      %32 = vector.broadcast %cst_15 : f32 to vector<1x1xf32>
      %33 = arith.mulf %31, %32 : vector<1x1xf32>
      %c0_16 = arith.constant 0 : index
      %c0_17 = arith.constant 0 : index
      %34 = vector.load %arg3[%c0_16, %c0_17] : memref<1x1xf32, #tpu.memory_space<vmem>>, vector<1x1xf32>
      tpu.vector_store %arg3[%c0_16, %c0_17], %33 {strides = array<i32>} : memref<1x1xf32, #tpu.memory_space<vmem>>, vector<1x1xf32>,
    } else {
    }
    return
  }
  func.func @transform_0(%arg0: i32) -> (i32, i32) {
    %c0_i32 = arith.constant 0 : i32
    %c0_i32_0 = arith.constant 0 : i32
    return %arg0, %c0_i32 : i32, i32
  }
  func.func @transform_1(%arg0: i32) -> (i32, i32) {
    %c0_i32 = arith.constant 0 : i32
    %c0_i32_0 = arith.constant 0 : i32
    return %arg0, %c0_i32 : i32, i32
  }
  func.func @transform_2(%arg0: i32) -> (i32, i32) {
    %c0_i32 = arith.constant 0 : i32
    %c0_i32_0 = arith.constant 0 : i32
    %c0_i32_1 = arith.constant 0 : i32
    return %c0_i32, %c0_i32_0 : i32, i32
  }
}

</mosaic_0001>

<bundles_post_ra>
// kernel: tpu_custom_call.1
= control target key start
LH: loop header
LB: loop body
LE: loop exit
PB: predicated region body
PF: predicated region fallthrough
CT: control target
= control target key end

     0   :  { %s145_s0 = inlined_call_operand.vmem [shape: f32[8,16], index: 0, kind: input, shape index: {}]   ;;  %s146_s1 = inlined_call_operand.vmem [shape: s32[8,1], index: 1, kind: input, shape index: {}]   ;;  %s147_s2 = inlined_call_operand.hbm [shape: f32[1,1], index: 2, kind: output, shape index: {}]  }
   0x1   :  { %v19_v0 = vld [vmem:[%s146_s1] sm:$0xff] }
   0x2   :  { %7 = vsyncpa [#allocation4], 0  ;;  %v106_v1 = vmov 0   ;;  %v20_v2 = vlaneseq  ;;  %v18_v4 = vld [vmem:[%s145_s0] sm:$0xff]  ;;  %vm36_vm0 = vcmask 130048   ;;  %vm41_vm2 = vcmask 7168  }
   0x3   :  { %81 = vset.pattern.permute.xlu0 %v106_v1  ;;  %vm16_vm3 = vcmask 0   ;;  %v107_v10 = vmov 0.0   ;;  %s108_s1 = smov [#allocation3]  }
   0x4   :  { %29 = vperm.xlu0 %81, %v19_v0   ;;  %v21_v3 = vand.u32 127, %v20_v2  ;;  %17 = vst.msk [vmem:[#allocation2] sm:$0x1] %vm16_vm3, %v107_v10  ;;  %s68_s13 = sshll.u32 %s108_s1, 4  ;;  %s69_s13 = int_to_ptr.vmem [resolvable:$true] %s68_s13 }
   0x5   :  { %s82_s14 = scalar_lea.vmem %s69_s13, 16  ;;  %s86_s15 = scalar_lea.vmem %s69_s13, 32 }
   0x6   :  { %p83_p0 = scmp.ne.s32.totalorder %s69_s13, %s82_s14  ;;  %p87_p1 = scmp.lt.s32.totalorder %s69_s13, %s69_s13 }
   0x7   :  { %p88_p2 = scmp.lt.s32.totalorder %s86_s15, %s82_s14 }
   0x9   :  { %p89_p3 = por %p88_p2, %p87_p1 }
   0xb   :  { %v40_v18 = vld [vmem:[#allocation2] sm:$0x1]  ;;  %p90_p4 = pnand %p89_p3, %p83_p0 }
  0x83   :  { %v30_v5 = vpop.permute.xlu0 %29 }
  0x84   :  { %vm31_vm1 = vcmp.eq.s32.totalorder %v21_v3, %v30_v5 }
  0x85   :  { %v35_v6 = vsel %vm31_vm1, %v18_v4, 0.0 }
  0x86   :  { %v37_v7 = vsel %vm36_vm0, %v35_v6, 0.0 }
  0x87   :  { %38 = vadd.xlane.f32.xlu0 %v37_v7 }
 0x114   :  { %v39_v8 = vpop.xlane.xlu0 %38 }
 0x115   :  { %v42_v9 = vsel %vm41_vm2, %v39_v8, 0.0 }
 0x116   :  { %43 = vadd.xlane.f32.xlu1 %v42_v9 }
 0x1a3   :  { %v44_v11 = vpop.xlane.xlu1 %43 }
 0x1a4   :  { %v45_v12 = vrot.slane %v44_v11, 4 }
 0x1a6   :  { %v46_v13 = vadd.f32 %v45_v12, %v44_v11 }
 0x1a8   :  { %v47_v14 = vrot.slane %v46_v13, 2 }
 0x1aa   :  { %v48_v15 = vadd.f32 %v47_v14, %v46_v13 }
 0x1ac   :  { %v49_v16 = vrot.slane %v48_v15, 1 }
 0x1ae   :  { %v50_v17 = vadd.f32 %v49_v16, %v48_v15 }
 0x1b0   :  { %76 = vpush %v50_v17 }
 0x1e1   :  { %s77_s0 = spop %76 }
 0x1e2   :  { %v52_v19 = vstv %s77_s0 }
 0x1e3   :  { %v53_v20 = vadd.f32 %v52_v19, %v40_v18 }
 0x1e5   :  { %55 = vst.msk [vmem:[#allocation2] sm:$0x1] %vm16_vm3, %v53_v20 }
 0x1ec   :  { %v59_v21 = vld [vmem:[#allocation2] sm:$0x1] }
 0x1ed   :  { %v60_v22 = vmul.f32 -0.125, %v59_v21 }
 0x1ef   :  { %61 = vst.msk [vmem:[#allocation3] sm:$0x1] %vm16_vm3, %v60_v22 }
 0x1f0   :  { %93 = shalt.err (!%p90_p4)
}
 0x1f1   :  { %s94_s18 = scalar_lea.hbm %s147_s2, 16 }
 0x1f2   :  { %p95_p5 = scmp.ne.s32.totalorder %s147_s2, %s94_s18  ;;  %p98_p6 = scmp.lt.u32.totalorder %s94_s18, %s147_s2 }
 0x1f4   :  { %p100_p7 = pnand %p98_p6, %p95_p5 }
 0x1f6   :  { %103 = shalt.err (!%p100_p7)
}
 0x1f7   :  { %71 = dma.vmem_to_hbm [thread:$0]  %s69_s13, 16, %s147_s2, [#allocation4]  }
 0x1f8   :  { %104 = dma.done.wait [#allocation4], 16  }
 0x1f9   :  { %105 = vsyncadd [#allocation4], 4294967280 }
 0x1fa   :  { %75 = vsyncpa [#allocation4], 1 }

</bundles_post_ra>
